<compile_context>
chip_gen: v5e
topology: v5e:2x2
jax: 0.10.0
libtpu: 0.0.40
codegen_flags: <defaults>
</compile_context>

<pallas_src>
import math

import jax
import jax.numpy as jnp
from jax import lax
from jax.experimental import pallas as pl
from jax.experimental.pallas import tpu as pltpu

HID = 32          # hidden width of both Linear(32, 32) layers
LANES = 128       # TPU lane width; output/score vector is padded to this
INV_SQRT_HID = 1.0 / math.sqrt(HID)


def _decoder_kernel(scal_ref, hs_ref, hT_ref, wsT_ref, bs_ref, ww_ref, out_ref):
    count_shifts = scal_ref[0]
    n_nodes = scal_ref[1]

    # shift_embedding = h[shift_id] @ Ws^T + bs                     -> [1, 32]
    shift_emb = (
        jnp.dot(hs_ref[...], wsT_ref[...], preferred_element_type=jnp.float32)
        + bs_ref[...]
    )

    # Fused worker projection, with the 1/sqrt(32) scale folded in:
    #   v = (shift_emb @ Ww) / sqrt(32)                             -> [1, 32]
    # (shift_emb . bw is constant across workers and cancels in softmax)
    v = (
        jnp.dot(shift_emb, ww_ref[...], preferred_element_type=jnp.float32)
        * INV_SQRT_HID
    )

    # scores over every node column, lane-dense                     -> [1, N_pad]
    scores = jnp.dot(v, hT_ref[...], preferred_element_type=jnp.float32)

    # mask out shift nodes (j < count_shifts) and lane padding (j >= n_nodes)
    col = lax.broadcasted_iota(jnp.int32, scores.shape, dimension=1)
    valid = (col >= count_shifts) & (col < n_nodes)
    masked = jnp.where(valid, scores, -jnp.inf)

    # softmax over the worker lanes
    m = jnp.max(masked, axis=-1, keepdims=True)
    e = jnp.exp(masked - m)
    denom = jnp.sum(e, axis=-1, keepdims=True)
    out_ref[...] = e * pl.reciprocal(denom, approx=True)


def prepare_params(params):
    """One-time parameter prep: kernel wants Ws pre-transposed and 2-D biases."""
    return {
        "wsT": jnp.asarray(params["ws"]).T,            # [in, out]
        "bs": jnp.asarray(params["bs"]).reshape(1, HID),
        "ww": jnp.asarray(params["ww"]),               # [out, in]; used as shift_emb @ Ww
        # params["bw"] shifts every score equally -> cancels in softmax; unused.
    }


def decoder_forward(h, shift_id, count_shifts, kparams):
    """h: [N, 32] float32 node features. Returns softmax over the W = N - count_shifts workers."""
    n_nodes, hid = h.shape
    assert hid == HID
    n_pad = ((n_nodes + LANES - 1) // LANES) * LANES

    # lane-dense node layout: hidden on sublanes, nodes on lanes    -> [32, N_pad]
    hT = jnp.zeros((HID, n_pad), jnp.float32).at[:, :n_nodes].set(h.T)
    # shift row: static [1, 32] shape, dynamic index (no retrace on shift_id)
    h_shift = lax.dynamic_slice_in_dim(h, shift_id, 1, axis=0)
    scalars = jnp.array([count_shifts, n_nodes], dtype=jnp.int32)

    full = lambda shape: pl.BlockSpec(shape, lambda: tuple(0 for _ in shape))

    out = pl.pallas_call(
        _decoder_kernel,
        out_shape=jax.ShapeDtypeStruct((1, n_pad), jnp.float32),
        grid=(),
        in_specs=[
            pl.BlockSpec(memory_space=pltpu.MemorySpace.SMEM),  # [count_shifts, N]
            full((1, HID)),        # h[shift_id]
            full((HID, n_pad)),    # h^T, zero-padded to a 128-lane multiple
            full((HID, HID)),      # Ws^T (pre-transposed)
            full((1, HID)),        # bs
            full((HID, HID)),      # Ww  (native [out, in] orientation)
        ],
        out_specs=full((1, n_pad)),
    )(scalars, h_shift, hT, kparams["wsT"], kparams["bs"], kparams["ww"])

    return out[0, count_shifts:n_nodes]                 # [W]


def init_params(key):
    # Deterministic synthetic init (PyTorch Linear default: U(-1/sqrt(in), 1/sqrt(in))).
    k1, k2, k3, k4 = jax.random.split(key, 4)
    bound = 1.0 / math.sqrt(HID)
    u = lambda k, shape: jax.random.uniform(
        k, shape, dtype=jnp.float32, minval=-bound, maxval=bound
    )
    return {
        "ww": u(k1, (HID, HID)),  # worker_attention_embedding.weight  [out, in]
        "bw": u(k2, (HID,)),      # worker_attention_embedding.bias
        "ws": u(k3, (HID, HID)),  # shift_attention_embedding.weight   [out, in]
        "bs": u(k4, (HID,)),      # shift_attention_embedding.bias
    }


def reference_forward(h, shift_id, count_shifts, params):
    worker_emb = h[count_shifts:] @ params["ww"].T + params["bw"]
    shift_emb = h[shift_id] @ params["ws"].T + params["bs"]
    scores = worker_emb @ shift_emb
    return jax.nn.softmax(scores / math.sqrt(HID), axis=0)


if __name__ == "__main__":
    key = jax.random.PRNGKey(0)
    k_params, k_h = jax.random.split(key)

    params = init_params(k_params)
    kparams = prepare_params(params)   # one-time layout prep (weight transpose)

    # Small synthetic graph: 12 nodes, first 4 are shifts, remaining 8 are workers.
    N, count_shifts, shift_id = 12, 4, 1
    h = jax.random.normal(k_h, (N, HID), dtype=jnp.float32)

    probs = decoder_forward(h, shift_id, count_shifts, kparams)
    probs = jax.block_until_ready(probs)

    ref = reference_forward(h, shift_id, count_shifts, params)
    assert probs.shape == (N - count_shifts,)
    # tolerance relaxed slightly because the softmax denominator uses the EUP
    # approximate reciprocal (pl.reciprocal(approx=True)); still ~1e-4 accurate.
    assert jnp.allclose(probs, ref, atol=2e-3, rtol=2e-3), float(jnp.max(jnp.abs(probs - ref)))
    assert jnp.allclose(jnp.sum(probs), 1.0, atol=2e-3)

    print("KERNEL_OK")
</pallas_src>

<mosaic_0001>
module attributes {stable_mosaic.version = 11 : i64} {
  func.func @_decoder_kernel(%arg0: memref<2xi32, #tpu.memory_space<smem>>, %arg1: memref<1x32xf32, #tpu.memory_space<vmem>>, %arg2: memref<32x128xf32, #tpu.memory_space<vmem>>, %arg3: memref<32x32xf32, #tpu.memory_space<vmem>>, %arg4: memref<1x32xf32, #tpu.memory_space<vmem>>, %arg5: memref<32x32xf32, #tpu.memory_space<vmem>>, %arg6: memref<1x128xf32, #tpu.memory_space<vmem>>) attributes {dimension_semantics = [], scalar_prefetch = 0 : i64, scratch_operands = 0 : i64, tpu.core_type = #tpu.core_type<tc>} {
    %c0 = arith.constant 0 : index
    %0 = memref.load %arg0[%c0] : memref<2xi32, #tpu.memory_space<smem>>
    %c1 = arith.constant 1 : index
    %1 = memref.load %arg0[%c1] : memref<2xi32, #tpu.memory_space<smem>>
    %c0_0 = arith.constant 0 : index
    %c0_1 = arith.constant 0 : index
    %2 = vector.load %arg1[%c0_0, %c0_1] : memref<1x32xf32, #tpu.memory_space<vmem>>, vector<1x32xf32>
    %c0_2 = arith.constant 0 : index
    %c0_3 = arith.constant 0 : index
    %3 = vector.load %arg3[%c0_2, %c0_3] : memref<32x32xf32, #tpu.memory_space<vmem>>, vector<32x32xf32>
    %cst = arith.constant dense<0.000000e+00> : vector<1x32xf32>
    %4 = tpu.matmul %2, %3, %cst {dimension_numbers = #tpu.dot_dimension_numbers<[1], [0], [0], [1], [0, 0, 1, 1], [], []>} : vector<1x32xf32>, vector<32x32xf32>, vector<1x32xf32> -> vector<1x32xf32>
    %c0_4 = arith.constant 0 : index
    %c0_5 = arith.constant 0 : index
    %5 = vector.load %arg4[%c0_4, %c0_5] : memref<1x32xf32, #tpu.memory_space<vmem>>, vector<1x32xf32>
    %6 = arith.addf %4, %5 : vector<1x32xf32>
    %c0_6 = arith.constant 0 : index
    %c0_7 = arith.constant 0 : index
    %7 = vector.load %arg5[%c0_6, %c0_7] : memref<32x32xf32, #tpu.memory_space<vmem>>, vector<32x32xf32>
    %cst_8 = arith.constant dense<0.000000e+00> : vector<1x32xf32>
    %8 = tpu.matmul %6, %7, %cst_8 {dimension_numbers = #tpu.dot_dimension_numbers<[1], [0], [0], [1], [0, 0, 1, 1], [], []>} : vector<1x32xf32>, vector<32x32xf32>, vector<1x32xf32> -> vector<1x32xf32>
    %cst_9 = arith.constant 0.176776692 : f32
    %9 = vector.broadcast %cst_9 : f32 to vector<1x32xf32>
    %10 = arith.mulf %8, %9 : vector<1x32xf32>
    %c0_10 = arith.constant 0 : index
    %c0_11 = arith.constant 0 : index
    %11 = vector.load %arg2[%c0_10, %c0_11] : memref<32x128xf32, #tpu.memory_space<vmem>>, vector<32x128xf32>
    %cst_12 = arith.constant dense<0.000000e+00> : vector<1x128xf32>
    %12 = tpu.matmul %10, %11, %cst_12 {dimension_numbers = #tpu.dot_dimension_numbers<[1], [0], [0], [1], [0, 0, 1, 1], [], []>} : vector<1x32xf32>, vector<32x128xf32>, vector<1x128xf32> -> vector<1x128xf32>
    %13 = tpu.iota {dimensions = array<i32: 1>} : vector<1x128xi32>
    %14 = vector.broadcast %0 : i32 to vector<1x128xi32>
    %15 = arith.cmpi sge, %13, %14 : vector<1x128xi32>
    %16 = vector.broadcast %1 : i32 to vector<1x128xi32>
    %17 = arith.cmpi slt, %13, %16 : vector<1x128xi32>
    %18 = arith.andi %15, %17 : vector<1x128xi1>
    %cst_13 = arith.constant 0xFF800000 : f32
    %19 = vector.broadcast %cst_13 : f32 to vector<1x128xf32>
    %20 = arith.select %18, %12, %19 : vector<1x128xi1>, vector<1x128xf32>
    %cst_14 = arith.constant dense<0xFF800000> : vector<1xf32>
    %21 = vector.multi_reduction <maximumf>, %20, %cst_14 [1] : vector<1x128xf32> to vector<1xf32>
    %22 = vector.shape_cast %21 : vector<1xf32> to vector<1x1xf32>
    %23 = vector.broadcast %22 : vector<1x1xf32> to vector<1x128xf32>
    %24 = arith.subf %20, %23 : vector<1x128xf32>
    %25 = math.exp %24 : vector<1x128xf32>
    %cst_15 = arith.constant dense<0.000000e+00> : vector<1xf32>
    %26 = vector.multi_reduction <add>, %25, %cst_15 [1] : vector<1x128xf32> to vector<1xf32>
    %27 = vector.shape_cast %26 : vector<1xf32> to vector<1x1xf32>
    %28 = tpu.reciprocal %27 {approx = true} : vector<1x1xf32> -> vector<1x1xf32>
    %29 = vector.broadcast %28 : vector<1x1xf32> to vector<1x128xf32>
    %30 = arith.mulf %25, %29 : vector<1x128xf32>
    %c0_16 = arith.constant 0 : index
    %c0_17 = arith.constant 0 : index
    %31 = vector.load %arg6[%c0_16, %c0_17] : memref<1x128xf32, #tpu.memory_space<vmem>>, vector<1x128xf32>
    tpu.vector_store %arg6[%c0_16, %c0_17], %30 {strides = array<i32>} : memref<1x128xf32, #tpu.memory_space<vmem>>, vector<1x128xf32>,
    return
  }
}

</mosaic_0001>

<bundles_post_ra>
// kernel: tpu_custom_call.1
= control target key start
LH: loop header
LB: loop body
LE: loop exit
PB: predicated region body
PF: predicated region fallthrough
CT: control target
= control target key end

     0   :  { %11 = vsyncpa [#allocation5], 0  ;;  %s451_s0 = inlined_call_operand.hbm [shape: s32[2], index: 0, kind: input, shape index: {}]   ;;  %s452_s1 = inlined_call_operand.hbm [shape: f32[1,32], index: 1, kind: input, shape index: {}]   ;;  %s453_s2 = inlined_call_operand.hbm [shape: f32[32,128], index: 2, kind: input, shape index: {}]   ;;  %s454_s3 = inlined_call_operand.hbm [shape: f32[32,32], index: 3, kind: input, shape index: {}]   ;;  %s455_s4 = inlined_call_operand.vmem [shape: f32[1,32], index: 4, kind: input, shape index: {}]   ;;  %s456_s5 = inlined_call_operand.hbm [shape: f32[32,32], index: 5, kind: input, shape index: {}]   ;;  %s457_s6 = inlined_call_operand.hbm [shape: f32[1,128], index: 6, kind: output, shape index: {}]  }
   0x1   :  { %12 = vsyncpa [#allocation3], 0 }
   0x2   :  { %13 = vsyncpa [#allocation8], 0 }
   0x3   :  { %14 = vsyncpa [#allocation11], 0  ;;  %s40_s23 = sshll.u32 %s453_s2, 4  ;;  %s41_s23 = int_to_ptr.hbm [resolvable:$true] %s40_s23 }
   0x4   :  { %15 = vsyncpa [#allocation4], 0  ;;  %s384_s24 = smov [#allocation7]   ;;  %s21_s28 = sshll.u32 %s451_s0, 4  ;;  %s22_s28 = int_to_ptr.hbm [resolvable:$true] %s21_s28 }
   0x5   :  { %s42_s25 = sshll.u32 %s384_s24, 4  ;;  %s385_s29 = smov 128   ;;  %s43_s25 = int_to_ptr.vmem [resolvable:$true] %s42_s25 }
   0x6   :  { %s386_s30 = smov 8   ;;  %s387_s7 = smov [#allocation2]  }
   0x7   :  { %48 = dma.hbm_to_vmem [thread:$0]  %s41_s23, 512, %s43_s25, [#allocation8], %s385_s29, %s385_s29, %s386_s30  }
   0x8   :  { %24 = dma.hbm_to_smem %s22_s28, 16, %s387_s7, [#allocation5]  }
   0x9   :  { %s30_s10 = sshll.u32 %s452_s1, 4  ;;  %s388_s2 = smov [#allocation6]   ;;  %s31_s10 = int_to_ptr.hbm [resolvable:$true] %s30_s10 }
   0xa   :  { %s32_s11 = sshll.u32 %s388_s2, 4  ;;  %s53_s14 = sshll.u32 %s454_s3, 4  ;;  %s33_s11 = int_to_ptr.vmem [resolvable:$true] %s32_s11  ;;  %s54_s14 = int_to_ptr.hbm [resolvable:$true] %s53_s14 }
   0xb   :  { %35 = dma.hbm_to_vmem [thread:$0]  %s31_s10, 16, %s33_s11, [#allocation3]  }
   0xc   :  { %s389_s0 = smov [#allocation9]   ;;  %s68_s18 = sshll.u32 %s456_s5, 4  ;;  %s69_s18 = int_to_ptr.hbm [resolvable:$true] %s68_s18 }
   0xd   :  { %s55_s15 = sshll.u32 %s389_s0, 4  ;;  %s390_s1 = smov [#allocation10]   ;;  %s56_s15 = int_to_ptr.vmem [resolvable:$true] %s55_s15 }
   0xe   :  { %61 = dma.hbm_to_vmem [thread:$0]  %s54_s14, 512, %s56_s15, [#allocation8], %s385_s29, %s385_s29, %s386_s30  }
   0xf   :  { %s70_s19 = sshll.u32 %s390_s1, 4  ;;  %s71_s19 = int_to_ptr.vmem [resolvable:$true] %s70_s19 }
  0x10   :  { %76 = dma.hbm_to_vmem [thread:$0]  %s69_s18, 512, %s71_s19, [#allocation11], %s385_s29, %s385_s29, %s386_s30  }
  0x11   :  { %374 = dma.done.wait [#allocation5], 16  }
  0x12   :  { %375 = vsyncadd [#allocation5], 4294967280 }
  0x13   :  { %376 = dma.done.wait [#allocation3], 16  }
  0x14   :  { %377 = vsyncadd [#allocation3], 4294967280 }
  0x15   :  { %378 = dma.done.wait [#allocation8], 1024  }
  0x16   :  { %379 = vsyncadd [#allocation8], 4294966272 }
  0x17   :  { %380 = dma.done.wait [#allocation11], 512  }
  0x18   :  { %381 = vsyncadd [#allocation11], 4294966784 }
  0x19   :  { %97 = sfence }
  0x1a   :  { %v104_v0 = vld [vmem:[#allocation9 + $0x18] sm:$0xff]  ;;  %v103_v1 = vld [vmem:[#allocation9 + $0x10] sm:$0xff]  ;;  %v102_v3 = vld [vmem:[#allocation9 + $0x8] sm:$0xff]  ;;  %vm106_vm0 = vcmask 261120   ;;  %s98_s20 = sld [smem:[#allocation2]]  ;;  %v185_v18 = vlaneseq  ;;  %vm193_vm4 = vcmask 1040384  }
  0x1b   :  { %122 = vmatpush.msra.mxu0 %v104_v0  ;;  %v133_v2 = vld [vmem:[#allocation10 + $0x18] sm:$0xff]  ;;  %v132_v4 = vld [vmem:[#allocation10 + $0x10] sm:$0xff]  ;;  %v101_v5 = vld [vmem:[#allocation9] sm:$0xff]  ;;  %s226_s21 = sld [smem:[#allocation2 + $0x1]]  ;;  %s213_s25 = sshll.u32 %s457_s6, 4  ;;  %s214_s25 = int_to_ptr.hbm [resolvable:$true] %s213_s25 }
  0x1c   :  { %149 = vmatpush.msra.mxu1 %v133_v2  ;;  %v100_v6 = vld [vmem:[#allocation6] sm:$0x1]  ;;  %v131_v7 = vld [vmem:[#allocation10 + $0x8] sm:$0xff]  ;;  %v130_v8 = vld [vmem:[#allocation10] sm:$0xff]  ;;  %v186_v19 = vand.u32 127, %v185_v18 }
  0x1d   :  { %123 = vmatpush.msra.mxu0 %v103_v1  ;;  %v161_v9 = vld [vmem:[#allocation7 + $0x18] sm:$0xff]  ;;  %v160_v10 = vld [vmem:[#allocation7 + $0x10] sm:$0xff]  ;;  %v159_v14 = vld [vmem:[#allocation7 + $0x8] sm:$0xff] }
  0x1e   :  { %150 = vmatpush.msra.mxu1 %v132_v4  ;;  %177 = vmatpush.msra.mxu2 %v161_v9  ;;  %v105_v11 = vld [vmem:[%s455_s4] sm:$0x1]  ;;  %v158_v15 = vld [vmem:[#allocation7] sm:$0xff]  ;;  %s391_s4 = smov [#allocation12]  }
  0x1f   :  { %124 = vmatpush.msra.mxu0 %v102_v3  ;;  %s211_s22 = sshll.u32 %s391_s4, 4  ;;  %s212_s22 = int_to_ptr.vmem [resolvable:$true] %s211_s22 }
  0x20   :  { %151 = vmatpush.msra.mxu1 %v131_v7  ;;  %178 = vmatpush.msra.mxu2 %v160_v10  ;;  %v187_v20 = vstv %s98_s20 }
  0x21   :  { %125 = vmatpush.msra.mxu0 %v101_v5  ;;  %v189_v21 = vstv %s226_s21  ;;  %vm188_vm1 = vcmp.ge.s32.totalorder %v186_v19, %v187_v20 }
  0x22   :  { %227 = vmatmul.msk.f32.vlgmr.msra.gmra.mxu0 %vm106_vm0, %v100_v6  ;;  %152 = vmatpush.msra.mxu1 %v130_v8  ;;  %vm190_vm2 = vcmp.lt.s32.totalorder %v186_v19, %v189_v21 }
  0x23   :  { %179 = vmatpush.msra.mxu2 %v159_v14  ;;  %vm191_vm3 = vmand %vm188_vm1, %vm190_vm2 }
  0x25   :  { %180 = vmatpush.msra.mxu2 %v158_v15 }
  0x9f   :  { %v127_v12 = vpop.f32.mrf.mxu0 }
  0xa0   :  { %v128_v13 = vadd.f32 %v127_v12, %v105_v11 }
  0xa2   :  { %228 = vmatmul.msk.f32.vlgmr.msra.gmra.mxu1 %vm106_vm0, %v128_v13 }
 0x11f   :  { %v154_v16 = vpop.f32.mrf.mxu1 }
 0x120   :  { %v157_v17 = vmul.f32 0.17677669, %v154_v16 }
 0x122   :  { %229 = vmatmul.msk.f32.vlgmr.msra.gmra.mxu2 %vm106_vm0, %v157_v17 }
 0x1a5   :  { %v182_v22 = vpop.f32.mrf.mxu2 }
 0x1a6   :  { %v192_v23 = vsel %vm191_vm3, %v182_v22, -inf }
 0x1a7   :  { %v194_v24 = vsel %vm193_vm4, %v192_v23, -inf }
 0x1a8   :  { %195 = vmax.xlane.f32.xlu0 %v194_v24 }
 0x21b   :  { %v196_v25 = vpop.xlane.xlu0 %195 }
 0x21c   :  { %v197_v26 = vsub.f32 %v192_v23, %v196_v25 }
 0x21e   :  { %v198_v27 = vmul.f32 1.442695, %v197_v26 }
 0x220   :  { %238 = vpow2.f32 %v198_v27 }
 0x226   :  { %v239_v28 = vpop.eup %238 }
 0x227   :  { %v200_v29 = vsel %vm193_vm4, %v239_v28, 0.0 }
 0x228   :  { %201 = vadd.xlane.f32.xlu0 %v200_v29 }
 0x29b   :  { %v202_v30 = vpop.xlane.xlu0 %201 }
 0x29c   :  { %240 = vrcp.f32 %v202_v30 }
 0x2a2   :  { %v241_v31 = vpop.eup %240 }
 0x2a3   :  { %v204_v32 = vmul.f32 %v241_v31, %v239_v28 }
 0x2a5   :  { %205 = vst [vmem:[#allocation12] sm:$0x1] %v204_v32 }
 0x2a6   :  { %216 = dma.vmem_to_hbm [thread:$0]  %s212_s22, 16, %s214_s25, [#allocation4]  }
 0x2a7   :  { %382 = dma.done.wait [#allocation4], 16  }
 0x2a8   :  { %383 = vsyncadd [#allocation4], 4294967280 }
 0x2a9   :  { %221 = vsyncpa [#allocation3], 1 }
 0x2aa   :  { %222 = vsyncpa [#allocation8], 1 }
 0x2ab   :  { %223 = vsyncpa [#allocation11], 1 }
 0x2ac   :  { %224 = vsyncpa [#allocation4], 1 }
 0x2ad   :  { %225 = vsyncpa [#allocation5], 1 }

</bundles_post_ra>
